<compile_context>
chip_gen: v6e
topology: v6e:2x2x1
jax: 0.10.0
libtpu: 0.0.40
codegen_flags: <defaults>
</compile_context>

<pallas_src>
import math
import functools

import jax
import jax.numpy as jnp
from jax import lax
from jax.experimental import pallas as pl
from jax.experimental.pallas import tpu as pltpu


def _box_muller_kernel(bits_ref, o_ref, *, intensity):
    """uint32 bits -> intensity * N(0,1) samples (paired Box-Muller)."""
    tile_r = bits_ref.shape[0]
    half = tile_r // 2

    bits = bits_ref[...]
    b1 = bits[:half, :]
    b2 = bits[half:, :]

    # uint32 -> uniform f32 in [0, 1): top 23 bits as the mantissa of a float
    # in [1, 2), then subtract 1.
    one_exp = jnp.uint32(0x3F800000)
    u_a = lax.bitcast_convert_type((b1 >> jnp.uint32(9)) | one_exp, jnp.float32) - 1.0
    u_b = lax.bitcast_convert_type((b2 >> jnp.uint32(9)) | one_exp, jnp.float32) - 1.0

    # Box-Muller, using BOTH outputs: u1 in (0, 1] avoids log(0).
    u1 = 1.0 - u_a
    theta = jnp.float32(2.0 * math.pi) * u_b
    r = jnp.sqrt(jnp.float32(-2.0) * jnp.log(u1))
    z0 = r * jnp.cos(theta)
    z1 = r * jnp.sin(theta)

    z = jnp.concatenate([z0, z1], axis=0)          # (tile_r, cols), full-tile store
    o_ref[...] = (jnp.float32(intensity) * z).astype(o_ref.dtype)


def _round_up(a, b):
    return (a + b - 1) // b * b


def random_generator(x, features=None, intensity=1.0, seed=0):
    """JAX/Pallas equivalent of RandomGenerator.forward."""
    out_shape = (x.shape[0], *features) if features is not None else x.shape
    dtype = jnp.dtype(x.dtype)
    if not jnp.issubdtype(dtype, jnp.floating):
        raise TypeError("random_generator only supports floating-point dtypes "
                        "(torch.randn_like would also reject integer tensors).")

    total = int(math.prod(out_shape))
    # Minimum sublane multiple for the packed output tile: 8 (f32), 16 (bf16), 32 (8-bit).
    sub = 8 * max(1, 4 // dtype.itemsize)

    # Prefer a tail-free lane-dense factorization (no padded-tail copy in the wrapper).
    cols = rows = None
    for c in (1024, 512, 256, 128):
        if total % c == 0 and (total // c) % sub == 0:
            cols, rows = c, total // c
            break
    if cols is None:
        cols = 512
        rows = _round_up(pl.cdiv(total, cols), sub)

    # ~2 MiB (f32) tiles: with double-buffered input+output this stays well under
    # scoped VMEM on v5e (16 MiB default) and physical VMEM on v7x (64 MiB).
    tile_r = min(rows, max(sub, (512 * 1024) // cols))
    num_tiles = pl.cdiv(rows, tile_r)
    rows_p = num_tiles * tile_r

    bits = jax.random.bits(jax.random.PRNGKey(seed), (rows_p, cols), dtype=jnp.uint32)

    flat = pl.pallas_call(
        functools.partial(_box_muller_kernel, intensity=float(intensity)),
        out_shape=jax.ShapeDtypeStruct((rows_p, cols), dtype),
        grid=(num_tiles,),
        in_specs=[pl.BlockSpec((tile_r, cols), lambda i: (i, 0))],
        out_specs=pl.BlockSpec((tile_r, cols), lambda i: (i, 0)),
        compiler_params=pltpu.CompilerParams(
            dimension_semantics=("parallel",)),
        cost_estimate=pl.CostEstimate(
            flops=10 * rows_p * cols,
            transcendentals=2 * rows_p * cols,
            bytes_accessed=rows_p * cols * (4 + dtype.itemsize)),
    )(bits)

    if rows_p * cols == total:
        return flat.reshape(out_shape)
    return flat.reshape(-1)[:total].reshape(out_shape)


if __name__ == "__main__":
    key = jax.random.PRNGKey(0)
    # NCHW input, consistent with the PyTorch module's typical usage.
    x = jax.random.normal(key, (2, 4, 16, 16), dtype=jnp.float32)

    # Case 1: features=None -> randn_like(x) * intensity
    y = random_generator(x, features=None, intensity=1.0, seed=0)
    y = jax.block_until_ready(y)
    assert y.shape == x.shape and y.dtype == x.dtype
    assert bool(jnp.all(jnp.isfinite(y)))

    # Case 2: explicit features -> shape (batch, *features) * intensity
    y2 = random_generator(x, features=(8, 32), intensity=0.5, seed=1)
    y2 = jax.block_until_ready(y2)
    assert y2.shape == (2, 8, 32) and y2.dtype == x.dtype
    assert bool(jnp.all(jnp.isfinite(y2)))

    # Sanity: roughly standard-normal statistics (loose tolerance, small sample).
    m = float(jnp.mean(y))
    s = float(jnp.std(y))
    assert abs(m) < 0.2 and 0.8 < s < 1.2, (m, s)

    # Intensity scaling sanity on case 2 (std ~ 0.5).
    s2 = float(jnp.std(y2))
    assert 0.3 < s2 < 0.7, s2

    print("KERNEL_OK")
</pallas_src>

<mosaic_0001>
module attributes {stable_mosaic.version = 11 : i64} {
  func.func @_box_muller_kernel(%arg0: i32, %arg1: memref<8x256xi32, #tpu.memory_space<vmem>>, %arg2: memref<8x256xf32, #tpu.memory_space<vmem>>) attributes {dimension_semantics = [#tpu.dimension_semantics<parallel>], iteration_bounds = array<i64: 1>, scalar_prefetch = 0 : i64, scratch_operands = 0 : i64, tpu.core_type = #tpu.core_type<tc>, window_params = [{transform_indices = @transform_0, window_bounds = array<i64: 8, 256>}, {transform_indices = @transform_1, window_bounds = array<i64: 8, 256>}]} {
    %c0 = arith.constant 0 : index
    %c0_0 = arith.constant 0 : index
    %0 = vector.load %arg1[%c0, %c0_0] : memref<8x256xi32, #tpu.memory_space<vmem>>, vector<8x256xi32>
    %1 = vector.extract_strided_slice %0 {offsets = [0, 0], sizes = [4, 256], strides = [1, 1]} : vector<8x256xi32> to vector<4x256xi32>
    %2 = vector.extract_strided_slice %0 {offsets = [4, 0], sizes = [4, 256], strides = [1, 1]} : vector<8x256xi32> to vector<4x256xi32>
    %c9_i32 = arith.constant 9 : i32
    %3 = vector.broadcast %c9_i32 : i32 to vector<4x256xi32>
    %4 = arith.shrui %1, %3 : vector<4x256xi32>
    %c1065353216_i32 = arith.constant 1065353216 : i32
    %5 = vector.broadcast %c1065353216_i32 : i32 to vector<4x256xi32>
    %6 = arith.ori %4, %5 : vector<4x256xi32>
    %7 = tpu.bitcast %6 : vector<4x256xi32> -> vector<4x256xf32>
    %cst = arith.constant 1.000000e+00 : f32
    %8 = vector.broadcast %cst : f32 to vector<4x256xf32>
    %9 = arith.subf %7, %8 : vector<4x256xf32>
    %c9_i32_1 = arith.constant 9 : i32
    %10 = vector.broadcast %c9_i32_1 : i32 to vector<4x256xi32>
    %11 = arith.shrui %2, %10 : vector<4x256xi32>
    %c1065353216_i32_2 = arith.constant 1065353216 : i32
    %12 = vector.broadcast %c1065353216_i32_2 : i32 to vector<4x256xi32>
    %13 = arith.ori %11, %12 : vector<4x256xi32>
    %14 = tpu.bitcast %13 : vector<4x256xi32> -> vector<4x256xf32>
    %cst_3 = arith.constant 1.000000e+00 : f32
    %15 = vector.broadcast %cst_3 : f32 to vector<4x256xf32>
    %16 = arith.subf %14, %15 : vector<4x256xf32>
    %cst_4 = arith.constant 1.000000e+00 : f32
    %17 = vector.broadcast %cst_4 : f32 to vector<4x256xf32>
    %18 = arith.subf %17, %9 : vector<4x256xf32>
    %cst_5 = arith.constant 6.28318548 : f32
    %19 = vector.broadcast %cst_5 : f32 to vector<4x256xf32>
    %20 = arith.mulf %19, %16 : vector<4x256xf32>
    %21 = math.log %18 : vector<4x256xf32>
    %cst_6 = arith.constant -2.000000e+00 : f32
    %22 = vector.broadcast %cst_6 : f32 to vector<4x256xf32>
    %23 = arith.mulf %22, %21 : vector<4x256xf32>
    %24 = math.sqrt %23 : vector<4x256xf32>
    %25 = math.cos %20 : vector<4x256xf32>
    %26 = arith.mulf %24, %25 : vector<4x256xf32>
    %27 = math.sin %20 : vector<4x256xf32>
    %28 = arith.mulf %24, %27 : vector<4x256xf32>
    %29 = tpu.concatenate %26, %28 in 0 : vector<4x256xf32>, vector<4x256xf32> -> vector<8x256xf32>
    %cst_7 = arith.constant 1.000000e+00 : f32
    %30 = vector.broadcast %cst_7 : f32 to vector<8x256xf32>
    %31 = arith.mulf %30, %29 : vector<8x256xf32>
    %c0_8 = arith.constant 0 : index
    %c0_9 = arith.constant 0 : index
    %32 = vector.load %arg2[%c0_8, %c0_9] : memref<8x256xf32, #tpu.memory_space<vmem>>, vector<8x256xf32>
    tpu.vector_store %arg2[%c0_8, %c0_9], %31 {strides = array<i32>} : memref<8x256xf32, #tpu.memory_space<vmem>>, vector<8x256xf32>,
    return
  }
  func.func @transform_0(%arg0: i32) -> (i32, i32) {
    %c0_i32 = arith.constant 0 : i32
    %c0_i32_0 = arith.constant 0 : i32
    return %arg0, %c0_i32 : i32, i32
  }
  func.func @transform_1(%arg0: i32) -> (i32, i32) {
    %c0_i32 = arith.constant 0 : i32
    %c0_i32_0 = arith.constant 0 : i32
    return %arg0, %c0_i32 : i32, i32
  }
}

</mosaic_0001>

<bundles_post_ra>
// kernel: tpu_custom_call.1
= control target key start
LH: loop header
LB: loop body
LE: loop exit
PB: predicated region body
PF: predicated region fallthrough
CT: control target
= control target key end

     0   :  { %6 = vsyncpa [#allocation3], 0  ;;  %s754_s0 = inlined_call_operand.hbm [shape: u32[8,256], index: 0, kind: input, shape index: {}]   ;;  %s755_s1 = inlined_call_operand.hbm [shape: f32[8,256], index: 1, kind: output, shape index: {}]  }
   0x1   :  { %7 = vsyncpa [#allocation4], 0  ;;  %s605_s6 = smov [#allocation2]  }
   0x2   :  { %s14_s7 = sshll.u32 %s605_s6, 4  ;;  %s15_s7 = int_to_ptr.vmem [resolvable:$true] %s14_s7 }
   0x3   :  { %s569_s8 = scalar_lea.vmem %s15_s7, 256  ;;  %p574_p1 = scmp.lt.s32.totalorder %s15_s7, %s15_s7 }
   0x4   :  { %p570_p0 = scmp.ne.s32.totalorder %s15_s7, %s569_s8  ;;  %p575_p2 = scmp.lt.s32.totalorder %s569_s8, %s569_s8 }
   0x6   :  { %p576_p3 = por %p575_p2, %p574_p1 }
   0x8   :  { %p577_p4 = pnand %p576_p3, %p570_p0 }
   0xa   :  { %580 = shalt.err (!%p577_p4)
}
   0xb   :  { %17 = dma.hbm_to_vmem [thread:$0]  %s754_s0, 256, %s15_s7, [#allocation3]  }
   0xc   :  { %601 = dma.done.wait [#allocation3], 256  }
   0xd   :  { %602 = vsyncadd [#allocation3], 4294967040  ;;  %v21_v0 = vld [vmem:[#allocation2] sm:$0xff]  ;;  %v22_v1 = vld [vmem:[#allocation2 + $0x8] sm:$0xff]  ;;  %v606_v22 = vmov 683565275  }
   0xe   :  { %v23_v2 = vshrl.u32 %v21_v0, 9  ;;  %v24_v3 = vshrl.u32 %v22_v1, 9  ;;  %v607_v24 = vmov 2475754826   ;;  %v608_v28 = vmov 2131351028  }
   0xf   :  { %v609_v30 = vmov 2102212464   ;;  %v610_v32 = vmov 920167782   ;;  %v611_v40 = vmov 1326507024  }
  0x10   :  { %v25_v4 = vor.u32 1065353216, %v23_v2  ;;  %v26_v5 = vor.u32 1065353216, %v24_v3  ;;  %s612_s0 = smov [#allocation5]  }
  0x11   :  { %s502_s11 = sshll.u32 %s612_s0, 4  ;;  %s503_s11 = int_to_ptr.vmem [resolvable:$true] %s502_s11 }
  0x12   :  { %v626_v6 = vadd.f32 -1.0, %v25_v4  ;;  %v628_v7 = vadd.f32 -1.0, %v26_v5  ;;  %s581_s12 = scalar_lea.vmem %s503_s11, 256  ;;  %p586_p6 = scmp.lt.s32.totalorder %s503_s11, %s503_s11 }
  0x13   :  { %p582_p5 = scmp.ne.s32.totalorder %s503_s11, %s581_s12  ;;  %p587_p7 = scmp.lt.s32.totalorder %s581_s12, %s581_s12 }
  0x14   :  { %v631_v8 = vmul.f32 6.2831855, %v626_v6  ;;  %v634_v9 = vmul.f32 6.2831855, %v628_v7 }
  0x15   :  { %p588_p8 = por %p587_p7, %p586_p6 }
  0x16   :  { %v58_v10 = vand.u32 2139095040, %v631_v8  ;;  %v161_v12 = vand.u32 2139095040, %v634_v9  ;;  %v55_v16 = vand.u32 2147483647, %v631_v8  ;;  %v158_v36 = vand.u32 2147483647, %v634_v9 }
  0x17   :  { %vm57_vm14 = vcmp.lt.s32.totalorder %v631_v8, 0  ;;  %p589_p9 = pnand %p588_p8, %p582_p5 }
  0x18   :  { %v59_v11 = vshrl.u32 %v58_v10, 23  ;;  %v162_v14 = vshrl.u32 %v161_v12, 23  ;;  %v62_v20 = vand.u32 8388607, %v55_v16  ;;  %v165_v48 = vand.u32 8388607, %v158_v36 }
  0x19   :  { %vm694_vm13 = vcmp.le.f32.partialorder %v55_v16, 0.7853982 }
  0x1a   :  { %v513_v13 = vadd.s32 4294967169, %v59_v11  ;;  %v517_v17 = vadd.s32 4294967169, %v162_v14  ;;  %v63_v37 = vor.u32 8388608, %v62_v20 }
  0x1c   :  { %v65_v15 = vadd.s32 1, %v513_v13  ;;  %v168_v26 = vadd.s32 1, %v517_v17  ;;  %v103_v49 = vshll.u32 %v63_v37, 8  ;;  %v166_v13 = vor.u32 8388608, %v165_v48 }
  0x1e   :  { %vm66_vm0 = vcmp.gt.s32.totalorder %v65_v15, 0  ;;  %vm169_vm1 = vcmp.gt.s32.totalorder %v168_v26, 0 }
  0x1f   :  { %v67_v18 = vsel %vm66_vm0, %v65_v15, 0  ;;  %v170_v50 = vsel %vm169_vm1, %v168_v26, 0  ;;  %vm160_vm0 = vcmp.lt.s32.totalorder %v634_v9, 0  ;;  %vm715_vm1 = vcmp.le.f32.partialorder %v158_v36, 0.7853982 }
  0x20   :  { %v69_v19 = vand.u32 31, %v67_v18  ;;  %v68_v27 = vshrl.u32 %v67_v18, 5  ;;  %v171_v60 = vshrl.u32 %v170_v50, 5  ;;  %v172_v0 = vand.u32 31, %v170_v50 }
  0x22   :  { %v70_v21 = vsub.s32 32, %v69_v19  ;;  %v72_v23 = vshll.u32 %v606_v22, %v69_v19  ;;  %v75_v25 = vshll.u32 %v607_v24, %v69_v19  ;;  %v78_v29 = vshll.u32 %v608_v28, %v69_v19 }
  0x23   :  { %v81_v31 = vshll.u32 %v609_v30, %v69_v19  ;;  %v84_v33 = vshll.u32 %v610_v32, %v69_v19  ;;  %vm87_vm2 = vcmp.lt.s32.totalorder %v68_v27, 1  ;;  %vm88_vm3 = vcmp.lt.s32.totalorder %v68_v27, 2 }
  0x24   :  { %v73_v34 = vshrl.u32 %v607_v24, %v70_v21  ;;  %v76_v35 = vshrl.u32 %v608_v28, %v70_v21  ;;  %v79_v38 = vshrl.u32 %v609_v30, %v70_v21  ;;  %v82_v39 = vshrl.u32 %v610_v32, %v70_v21 }
  0x25   :  { %v85_v41 = vshrl.u32 %v611_v40, %v70_v21  ;;  %v71_v42 = vshrl.u32 %v606_v22, %v70_v21  ;;  %vm89_vm4 = vcmp.lt.s32.totalorder %v68_v27, 3  ;;  %vm90_vm5 = vcmp.lt.s32.totalorder %v68_v27, 4 }
  0x26   :  { %v74_v43 = vor.u32 %v73_v34, %v72_v23  ;;  %v77_v44 = vor.u32 %v76_v35, %v75_v25  ;;  %v80_v45 = vor.u32 %v79_v38, %v78_v29  ;;  %v83_v46 = vor.u32 %v82_v39, %v81_v31 }
  0x27   :  { %v86_v47 = vor.u32 %v85_v41, %v84_v33  ;;  %v173_v5 = vsub.s32 32, %v172_v0  ;;  %v175_v10 = vshll.u32 %v606_v22, %v172_v0  ;;  %v178_v11 = vshll.u32 %v607_v24, %v172_v0 }
  0x28   :  { %v91_v51 = vsel %vm87_vm2, %v71_v42, %v74_v43  ;;  %v95_v52 = vsel %vm87_vm2, %v74_v43, %v77_v44  ;;  %v99_v53 = vsel %vm87_vm2, %v77_v44, %v80_v45  ;;  %v92_v54 = vsel %vm90_vm5, %v80_v45, 2102212464 }
  0x29   :  { %v96_v55 = vsel %vm90_vm5, %v83_v46, 920167782  ;;  %v100_v56 = vsel %vm90_vm5, %v86_v47, 1326507024  ;;  %v93_v57 = vsel %vm89_vm4, %v77_v44, %v92_v54  ;;  %v181_v14 = vshll.u32 %v608_v28, %v172_v0 }
  0x2a   :  { %v97_v58 = vsel %vm89_vm4, %v80_v45, %v96_v55  ;;  %v101_v59 = vsel %vm89_vm4, %v83_v46, %v100_v56  ;;  %v94_v61 = vsel %vm88_vm3, %v91_v51, %v93_v57  ;;  %v184_v15 = vshll.u32 %v609_v30, %v172_v0 }
  0x2b   :  { %v98_v62 = vsel %vm88_vm3, %v95_v52, %v97_v58  ;;  %v102_v63 = vsel %vm88_vm3, %v99_v53, %v101_v59  ;;  %v110_v12 = vmul.u32 %v103_v49, %v94_v61  ;;  %v176_v17 = vshrl.u32 %v607_v24, %v173_v5 }
  0x2c   :  { %v649_v1 = vmul.u32.u64.low %v103_v49, %v102_v63  ;;  %v650_v2 = vmul.u32.u64.high %v103_v49, %v102_v63, %v649_v1  ;;  %v652_v3 = vmul.u32.u64.low %v103_v49, %v98_v62  ;;  %v653_v4 = vmul.u32.u64.high %v103_v49, %v98_v62, %v652_v3 }
  0x2d   :  { %v179_v18 = vshrl.u32 %v608_v28, %v173_v5  ;;  %v182_v19 = vshrl.u32 %v609_v30, %v173_v5  ;;  %v187_v20 = vshll.u32 %v610_v32, %v172_v0  ;;  %v185_v23 = vshrl.u32 %v610_v32, %v173_v5 }
  0x2e   :  { %vm112_vm6 = vc.u32 %v650_v2, %v652_v3  ;;  %v113_v21 = vadd.s32 1, %v653_v4  ;;  %vm190_vm7 = vcmp.lt.s32.totalorder %v171_v60, 1  ;;  %v177_v25 = vor.u32 %v176_v17, %v175_v10 }
  0x2f   :  { %v180_v26 = vor.u32 %v179_v18, %v178_v11  ;;  %v183_v27 = vor.u32 %v182_v19, %v181_v14  ;;  %v188_v29 = vshrl.u32 %v611_v40, %v173_v5  ;;  %v174_v33 = vshrl.u32 %v606_v22, %v173_v5 }
  0x30   :  { %v114_v31 = vsel %vm112_vm6, %v113_v21, %v653_v4  ;;  %v186_v34 = vor.u32 %v185_v23, %v184_v15  ;;  %vm192_vm8 = vcmp.lt.s32.totalorder %v171_v60, 3  ;;  %vm191_vm9 = vcmp.lt.s32.totalorder %v171_v60, 2 }
  0x31   :  { %v115_v24 = vadd.s32 %v114_v31, %v110_v12  ;;  %v189_v28 = vor.u32 %v188_v29, %v187_v20  ;;  %vm193_vm10 = vcmp.lt.s32.totalorder %v171_v60, 4  ;;  %v198_v35 = vsel %vm190_vm7, %v177_v25, %v180_v26 }
  0x32   :  { %v195_v30 = vsel %vm193_vm10, %v183_v27, 2102212464  ;;  %v199_v37 = vsel %vm193_vm10, %v186_v34, 920167782  ;;  %v206_v32 = vshll.u32 %v166_v13, 8  ;;  %v31_v40 = vsub.f32 1.0, %v626_v6 }
  0x33   :  { %v116_v38 = vadd.s32 536870912, %v115_v24  ;;  %v200_v39 = vsel %vm192_vm8, %v183_v27, %v199_v37  ;;  %v202_v22 = vsel %vm190_vm7, %v180_v26, %v183_v27  ;;  %v194_v43 = vsel %vm190_vm7, %v174_v33, %v177_v25 }
  0x34   :  { %v201_v41 = vsel %vm191_vm9, %v198_v35, %v200_v39  ;;  %v196_v44 = vsel %vm192_vm8, %v180_v26, %v195_v30  ;;  %v203_v45 = vsel %vm193_vm10, %v189_v28, 1326507024  ;;  %545 = vlog2.f32 %v31_v40 }
  0x35   :  { %v667_v42 = vshrl.u32 %v116_v38, 30  ;;  %v204_v46 = vsel %vm192_vm8, %v186_v34, %v203_v45  ;;  %v672_v47 = vmul.u32.u64.low %v206_v32, %v201_v41  ;;  %v673_v48 = vmul.u32.u64.high %v206_v32, %v201_v41, %v672_v47 }
  0x36   :  { %v205_v6 = vsel %vm191_vm9, %v202_v22, %v204_v46  ;;  %v197_v50 = vsel %vm191_vm9, %v194_v43, %v196_v44  ;;  %v32_v60 = vsub.f32 1.0, %v628_v7  ;;  %v111_v0 = vadd.s32 %v652_v3, %v650_v2 }
  0x37   :  { %v118_v49 = vshll.u32 %v667_v42, 30  ;;  %v678_v51 = vmul.u32.u64.low %v206_v32, %v205_v6  ;;  %v679_v52 = vmul.u32.u64.high %v206_v32, %v205_v6, %v678_v51  ;;  %v216_v54 = vadd.s32 1, %v673_v48 }
  0x38   :  { %v213_v56 = vmul.u32 %v206_v32, %v197_v50  ;;  %547 = vlog2.f32 %v32_v60  ;;  %v141_v33 = vsub.s32 4, %v667_v42  ;;  %vm147_vm3 = vweird.f32 %v631_v8 }
  0x39   :  { %v119_v53 = vsub.s32 %v115_v24, %v118_v49  ;;  %vm215_vm11 = vc.u32 %v679_v52, %v672_v47  ;;  %v214_v24 = vadd.s32 %v672_v47, %v679_v52 }
  0x3a   :  { %v217_v58 = vsel %vm215_vm11, %v216_v54, %v673_v48  ;;  %v142_v16 = vsel %vm57_vm14, %v141_v33, %v667_v42  ;;  %vm491_vm11 = vcmask 1043456  }
  0x3b   :  { %v121_v55 = vsub.s32 0, %v119_v53  ;;  %v218_v61 = vadd.s32 %v217_v58, %v213_v56  ;;  %v144_v43 = vsel %vm694_vm13, 0, %v142_v16 }
  0x3c   :  { %v362_v48 = vadd.s32 3, %v144_v43  ;;  %v148_v51 = vand.u32 3, %v144_v43 }
  0x3d   :  { %v514_v57 = vmin.u32 %v121_v55, %v119_v53  ;;  %v219_v63 = vadd.s32 536870912, %v218_v61 }
  0x3e   :  { %vm153_vm5 = vcmp.eq.s32.totalorder %v148_v51, 2  ;;  %vm150_vm7 = vcmp.eq.s32.totalorder %v148_v51, 0  ;;  %vm149_vm9 = vcmp.lt.s32.totalorder %v148_v51, 2 }
  0x3f   :  { %v123_v59 = vclz %v514_v57  ;;  %v687_v1 = vshrl.u32 %v219_v63, 30 }
  0x41   :  { %v515_v62 = vadd.s32 4294967294, %v123_v59  ;;  %v221_v12 = vshll.u32 %v687_v1, 30  ;;  %v546_v13 = vpop.eup %545  ;;  %v244_v52 = vsub.s32 4, %v687_v1 }
  0x42   :  { %v36_v18 = vmul.f32 0.6931472, %v546_v13 }
  0x43   :  { %vm516_vm12 = vcmp.lt.s32.totalorder %v515_v62, 0  ;;  %v222_v17 = vsub.s32 %v218_v61, %v221_v12  ;;  %v245_v61 = vsel %vm160_vm0, %v244_v52, %v687_v1 }
  0x44   :  { %v126_v4 = vsel %vm516_vm12, 0, %v515_v62  ;;  %v690_v23 = vmul.f32 -2.0, %v36_v18  ;;  %v247_v1 = vsel %vm715_vm1, 0, %v245_v61 }
  0x45   :  { %v127_v5 = vsub.s32 32, %v126_v4  ;;  %v128_v10 = vshll.u32 %v119_v53, %v126_v4  ;;  %v131_v11 = vsub.s32 4294967266, %v126_v4  ;;  %v224_v20 = vsub.s32 0, %v222_v17  ;;  %v548_v38 = vpop.eup %547 }
  0x46   :  { %549 = vrsqrt.f32 %v690_v23  ;;  %v38_v22 = vmul.f32 0.6931472, %v548_v38  ;;  %v363_v53 = vand.u32 3, %v362_v48  ;;  %vm43_vm2 = vcmp.eq.f32.partialorder %v690_v23, inf }
  0x47   :  { %v129_v14 = vshrl.u32 %v111_v0, %v127_v5  ;;  %v132_v15 = vadd.s32 127, %v131_v11  ;;  %v518_v3 = vmin.u32 %v224_v20, %v222_v17  ;;  %vm45_vm4 = vcmp.eq.f32.partialorder %v690_v23, 0.0 }
  0x48   :  { %v708_v49 = vmul.f32 -2.0, %v38_v22  ;;  %v46_v57 = vand.u32 2147483648, %v690_v23  ;;  %vm368_vm6 = vcmp.eq.s32.totalorder %v363_v53, 2  ;;  %vm365_vm8 = vcmp.eq.s32.totalorder %v363_v53, 0 }
  0x49   :  { %v130_v19 = vor.u32 %v129_v14, %v128_v10  ;;  %v133_v7 = vshll.u32 %v132_v15, 23  ;;  %v226_v26 = vclz %v518_v3  ;;  %vm364_vm10 = vcmp.lt.s32.totalorder %v363_v53, 2 }
  0x4a   :  { %v466_v18 = vadd.s32 3, %v247_v1  ;;  %v251_v3 = vand.u32 3, %v247_v1  ;;  %vm50_vm12 = vcmp.eq.f32.partialorder %v708_v49, inf  ;;  %v53_v33 = vand.u32 2147483648, %v708_v49 }
  0x4b   :  { %v134_v21 = vor.u32 4788187, %v133_v7  ;;  %v137_v2 = vcvt.s32.f32 %v130_v19  ;;  %v519_v29 = vadd.s32 4294967294, %v226_v26 }
  0x4d   :  { %v135_v25 = vand.u32 2147483647, %v134_v21  ;;  %vm520_vm15 = vcmp.lt.s32.totalorder %v519_v29, 0 }
  0x4e   :  { %v229_v28 = vsel %vm520_vm15, 0, %v519_v29  ;;  %vm250_vm15 = vweird.f32 %v634_v9 }
  0x4f   :  { %v138_v27 = vmul.f32 %v137_v2, %v135_v25  ;;  %v230_v35 = vsub.s32 32, %v229_v28  ;;  %v231_v37 = vshll.u32 %v222_v17, %v229_v28  ;;  %v234_v32 = vsub.s32 4294967266, %v229_v28 }
  0x50   :  { %v467_v25 = vand.u32 3, %v466_v18 }
  0x51   :  { %v139_v34 = vxor.u32 2147483648, %v138_v27  ;;  %v232_v40 = vshrl.u32 %v214_v24, %v230_v35  ;;  %v235_v41 = vadd.s32 127, %v234_v32 }
  0x53   :  { %v140_v30 = vsel %vm57_vm14, %v139_v34, %v138_v27  ;;  %v233_v44 = vor.u32 %v232_v40, %v231_v37  ;;  %v236_v45 = vshll.u32 %v235_v41, 23  ;;  %v550_v50 = vpop.eup %549  ;;  %vm472_vm14 = vcmp.eq.s32.totalorder %v467_v25, 2 }
  0x54   :  { %v143_v39 = vsel %vm694_vm13, %v631_v8, %v140_v30  ;;  %v42_v56 = vmul.f32 %v550_v50, %v690_v23  ;;  %vm256_vm13 = vcmp.eq.s32.totalorder %v251_v3, 2 }
  0x55   :  { %551 = vcosq.f32 %v143_v39  ;;  %v237_v46 = vor.u32 4788187, %v236_v45  ;;  %v240_v47 = vcvt.s32.f32 %v233_v44 }
  0x56   :  { %553 = vsinq.f32 %v143_v39  ;;  %v44_v0 = vsel %vm43_vm2, %v690_v23, %v42_v56  ;;  %vm252_vm2 = vcmp.lt.s32.totalorder %v251_v3, 2 }
  0x57   :  { %v238_v42 = vand.u32 2147483647, %v237_v46  ;;  %555 = vrsqrt.f32 %v708_v49  ;;  %v47_v14 = vsel %vm45_vm4, %v46_v57, %v44_v0  ;;  %vm52_vm4 = vcmp.eq.f32.partialorder %v708_v49, 0.0 }
  0x59   :  { %v241_v6 = vmul.f32 %v240_v47, %v238_v42 }
  0x5b   :  { %v242_v55 = vxor.u32 2147483648, %v241_v6 }
  0x5d   :  { %v243_v58 = vsel %vm160_vm0, %v242_v55, %v241_v6  ;;  %vm253_vm0 = vcmp.eq.s32.totalorder %v251_v3, 0 }
  0x5e   :  { %v246_v36 = vsel %vm715_vm1, %v634_v9, %v243_v58  ;;  %vm469_vm1 = vcmp.eq.s32.totalorder %v467_v25, 0 }
  0x5f   :  { %557 = vcosq.f32 %v246_v36 }
  0x60   :  { %559 = vsinq.f32 %v246_v36 }
  0x62   :  { %v552_v59 = vpop.eup %551 }
  0x63   :  { %v554_v62 = vpop.eup %553  ;;  %v154_v63 = vxor.u32 2147483648, %v552_v59 }
  0x64   :  { %v151_v60 = vxor.u32 2147483648, %v554_v62  ;;  %v556_v2 = vpop.eup %555 }
  0x65   :  { %v155_v4 = vsel %vm153_vm5, %v154_v63, %v554_v62  ;;  %v370_v5 = vsel %vm368_vm6, %v154_v63, %v554_v62  ;;  %v49_v27 = vmul.f32 %v556_v2, %v708_v49 }
  0x66   :  { %v152_v10 = vsel %vm150_vm7, %v552_v59, %v151_v60  ;;  %v367_v11 = vsel %vm365_vm8, %v552_v59, %v151_v60 }
  0x67   :  { %v156_v12 = vsel %vm149_vm9, %v152_v10, %v155_v4  ;;  %v371_v13 = vsel %vm364_vm10, %v367_v11, %v370_v5  ;;  %v51_v24 = vsel %vm50_vm12, %v708_v49, %v49_v27 }
  0x68   :  { %v157_v15 = vsel %vm147_vm3, nan, %v156_v12  ;;  %v372_v17 = vsel %vm147_vm3, nan, %v371_v13  ;;  %vm468_vm3 = vcmp.lt.s32.totalorder %v467_v25, 2  ;;  %v54_v16 = vsel %vm52_vm4, %v53_v33, %v51_v24 }
  0x69   :  { %v263_v19 = vrot.slane %v157_v15, 4  ;;  %v479_v7 = vrot.slane %v372_v17, 4 }
  0x6b   :  { %v267_v20 = vmul.f32 %v263_v19, %v47_v14  ;;  %v483_v21 = vmul.f32 %v479_v7, %v47_v14 }
  0x6c   :  { %v558_v29 = vpop.eup %557 }
  0x6d   :  { %v487_v26 = vrot.slane %v483_v21, 4  ;;  %v560_v8 = vpop.eup %559  ;;  %v257_v31 = vxor.u32 2147483648, %v558_v29 }
  0x6e   :  { %v254_v34 = vxor.u32 2147483648, %v560_v8 }
  0x6f   :  { %v492_v23 = vsel %vm491_vm11, %v267_v20, %v487_v26  ;;  %v258_v28 = vsel %vm256_vm13, %v257_v31, %v560_v8  ;;  %v474_v30 = vsel %vm472_vm14, %v257_v31, %v560_v8 }
  0x70   :  { %494 = vst [vmem:[#allocation5] sm:$0xff] %v492_v23  ;;  %v255_v35 = vsel %vm253_vm0, %v558_v29, %v254_v34  ;;  %v471_v37 = vsel %vm469_vm1, %v558_v29, %v254_v34 }
  0x71   :  { %v259_v32 = vsel %vm252_vm2, %v255_v35, %v258_v28  ;;  %v475_v38 = vsel %vm468_vm3, %v471_v37, %v474_v30 }
  0x72   :  { %v260_v39 = vsel %vm250_vm15, nan, %v259_v32  ;;  %v476_v40 = vsel %vm250_vm15, nan, %v475_v38 }
  0x73   :  { %v264_v41 = vrot.slane %v260_v39, 4  ;;  %v480_v22 = vrot.slane %v476_v40, 4 }
  0x75   :  { %v268_v43 = vmul.f32 %v264_v41, %v54_v16  ;;  %v484_v44 = vmul.f32 %v480_v22, %v54_v16 }
  0x77   :  { %v488_v45 = vrot.slane %v484_v44, 4 }
  0x79   :  { %v493_v46 = vsel %vm491_vm11, %v268_v43, %v488_v45 }
  0x7a   :  { %495 = vst [vmem:[#allocation5 + $0x8] sm:$0xff] %v493_v46 }
  0x7b   :  { %592 = shalt.err (!%p589_p9)
}
  0x7c   :  { %505 = dma.vmem_to_hbm [thread:$0]  %s503_s11, 256, %s755_s1, [#allocation4]  }
  0x7d   :  { %603 = dma.done.wait [#allocation4], 256  }
  0x7e   :  { %604 = vsyncadd [#allocation4], 4294967040 }
  0x7f   :  { %509 = vsyncpa [#allocation3], 1 }
  0x80   :  { %510 = vsyncpa [#allocation4], 1 }

</bundles_post_ra>
